<compile_context>
chip_gen: v5e
topology: v5e:2x2
jax: 0.10.0
libtpu: 0.0.40
codegen_flags: <defaults>
</compile_context>

<pallas_src>
import jax
import jax.numpy as jnp
from jax.experimental import pallas as pl
from jax.experimental.pallas import tpu as pltpu


# ----------------------------------------------------------------------------
# Fused kernel: (x @ W_folded) + b_folded -> sigmoid -> x*y + x
# ----------------------------------------------------------------------------
def _slam_kernel(x_ref, w_ref, b_ref, o_ref):
    x = x_ref[...]                                            # (tm, C) f32
    z = jnp.dot(
        x.astype(jnp.bfloat16),                               # bf16 MXU inputs
        w_ref[...],                                           # (C, C) bf16
        preferred_element_type=jnp.float32,                   # f32 accumulate
    )
    v = z + b_ref[...]                                        # folded BN bias
    y = pl.reciprocal(1.0 + jnp.exp(-v), approx=True)         # sigmoid on EUP
    o_ref[...] = (x * y + x).astype(o_ref.dtype)              # mul + residual


def _pick_tm(m):
    # Largest row tile that divides M; prefer >= 2 grid steps so the
    # "parallel" grid axis can be sharded across v7x's two TensorCores.
    for tm in (512, 256, 128, 64, 32, 16, 8):
        if m % tm == 0 and m // tm >= 2:
            return tm
    for tm in (512, 256, 128, 64, 32, 16, 8):
        if m % tm == 0:
            return tm
    return m  # single full-extent block (always legal)


def slam_rows(x_flat, w_bf16, bias_folded):
    """x_flat: [M, C] f32, w_bf16: [C, C] bf16 (BN-folded), bias: [C] f32."""
    M, C = x_flat.shape
    assert w_bf16.shape == (C, C)
    tm = _pick_tm(M)
    grid = (M // tm,)
    bias2 = bias_folded.reshape(1, C).astype(jnp.float32)

    cost = pl.CostEstimate(
        flops=2 * M * C * C,
        transcendentals=M * C,  # exp in the sigmoid
        bytes_accessed=M * C * 4 + C * C * 2 + C * 4 + M * C * 4,
    )

    return pl.pallas_call(
        _slam_kernel,
        out_shape=jax.ShapeDtypeStruct((M, C), x_flat.dtype),
        grid_spec=pltpu.PrefetchScalarGridSpec(
            num_scalar_prefetch=0,
            grid=grid,
            in_specs=[
                pl.BlockSpec((tm, C), lambda i: (i, 0)),   # activation rows
                pl.BlockSpec((C, C), lambda i: (0, 0)),    # weights (resident)
                pl.BlockSpec((1, C), lambda i: (0, 0)),    # folded bias
            ],
            out_specs=pl.BlockSpec((tm, C), lambda i: (i, 0)),
        ),
        compiler_params=pltpu.CompilerParams(
            dimension_semantics=("parallel",),
        ),
        cost_estimate=cost,
    )(x_flat, w_bf16, bias2)


# ----------------------------------------------------------------------------
# Module wrapper: NCHW in / NCHW out, single layout round-trip.
# ----------------------------------------------------------------------------
def slam_forward(params, x_nchw):
    N, C, H, W = x_nchw.shape
    x_flat = jnp.transpose(x_nchw, (0, 2, 3, 1)).reshape(N * H * W, C)
    y_flat = slam_rows(x_flat, params["w_bf16"], params["bias"])
    return jnp.transpose(y_flat.reshape(N, H, W, C), (0, 3, 1, 2))


# ----------------------------------------------------------------------------
# Parameter init (deterministic, synthetic).  BN folded in eval mode:
#   s = gamma / sqrt(running_var + eps)
#   W_folded = W * s[None, :] ;  b_folded = (b_conv - running_mean) * s + beta
# ----------------------------------------------------------------------------
def init_slam_params(key, channels, eps=1e-5):
    kw, kb, kg, kbe, km, kv = jax.random.split(key, 6)
    w = jax.random.normal(kw, (channels, channels), jnp.float32) / jnp.sqrt(
        float(channels)
    )
    b_conv = 0.1 * jax.random.normal(kb, (channels,), jnp.float32)
    gamma = 1.0 + 0.1 * jax.random.normal(kg, (channels,), jnp.float32)
    beta = 0.1 * jax.random.normal(kbe, (channels,), jnp.float32)
    r_mean = 0.1 * jax.random.normal(km, (channels,), jnp.float32)
    r_var = 1.0 + 0.5 * jax.random.uniform(kv, (channels,), jnp.float32)

    s = gamma / jnp.sqrt(r_var + eps)
    w_folded = w * s[None, :]
    bias_folded = (b_conv - r_mean) * s + beta
    return {
        "w_bf16": w_folded.astype(jnp.bfloat16),  # bf16 weights for the kernel
        "w_f32": w_folded,                        # f32 copy for the reference
        "bias": bias_folded,
    }


# ----------------------------------------------------------------------------
# Pure-JAX reference (f32) for a correctness sanity check.
# ----------------------------------------------------------------------------
def slam_reference(params, x_nchw):
    N, C, H, W = x_nchw.shape
    x_flat = jnp.transpose(x_nchw, (0, 2, 3, 1)).reshape(N * H * W, C)
    z = x_flat @ params["w_f32"] + params["bias"][None, :]
    y = jax.nn.sigmoid(z)
    out = x_flat * y + x_flat
    return jnp.transpose(out.reshape(N, H, W, C), (0, 3, 1, 2))


if __name__ == "__main__":
    key = jax.random.PRNGKey(0)
    kp, kx = jax.random.split(key)

    # Small SLAM-typical shape: batch=2, channels=128 (lane-dense), 16x16.
    C = 128
    params = init_slam_params(kp, C)
    x = jax.random.normal(kx, (2, C, 16, 16), jnp.float32)

    fwd = jax.jit(slam_forward)
    out = fwd(params, x)
    jax.block_until_ready(out)

    assert out.shape == x.shape, out.shape
    assert bool(jnp.all(jnp.isfinite(out)))

    # Loose tolerance: bf16 matmul operands + approx reciprocal vs f32 ref.
    ref = slam_reference(params, x)
    assert bool(jnp.allclose(out, ref, rtol=3e-2, atol=3e-2)), float(
        jnp.max(jnp.abs(out - ref))
    )
    print("KERNEL_OK")
</pallas_src>

<mosaic_0001>
module attributes {stable_mosaic.version = 11 : i64} {
  func.func @_slam_kernel(%arg0: i32, %arg1: memref<256x128xf32, #tpu.memory_space<vmem>>, %arg2: memref<128x128xbf16, #tpu.memory_space<vmem>>, %arg3: memref<1x128xf32, #tpu.memory_space<vmem>>, %arg4: memref<256x128xf32, #tpu.memory_space<vmem>>) attributes {dimension_semantics = [#tpu.dimension_semantics<parallel>], iteration_bounds = array<i64: 2>, scalar_prefetch = 0 : i64, scratch_operands = 0 : i64, tpu.core_type = #tpu.core_type<tc>, window_params = [{transform_indices = @transform_0, window_bounds = array<i64: 256, 128>}, {pipeline_mode = #tpu.pipeline_mode<synchronous>, transform_indices = @transform_1, window_bounds = array<i64: 128, 128>}, {pipeline_mode = #tpu.pipeline_mode<synchronous>, transform_indices = @transform_2, window_bounds = array<i64: 1, 128>}, {transform_indices = @transform_3, window_bounds = array<i64: 256, 128>}]} {
    %c0 = arith.constant 0 : index
    %c0_0 = arith.constant 0 : index
    %0 = vector.load %arg1[%c0, %c0_0] : memref<256x128xf32, #tpu.memory_space<vmem>>, vector<256x128xf32>
    %1 = arith.truncf %0 : vector<256x128xf32> to vector<256x128xbf16>
    %c0_1 = arith.constant 0 : index
    %c0_2 = arith.constant 0 : index
    %2 = vector.load %arg2[%c0_1, %c0_2] : memref<128x128xbf16, #tpu.memory_space<vmem>>, vector<128x128xbf16>
    %cst = arith.constant dense<0.000000e+00> : vector<256x128xf32>
    %3 = tpu.matmul %1, %2, %cst {dimension_numbers = #tpu.dot_dimension_numbers<[1], [0], [0], [1], [0, 0, 1, 1], [], []>} : vector<256x128xbf16>, vector<128x128xbf16>, vector<256x128xf32> -> vector<256x128xf32>
    %c0_3 = arith.constant 0 : index
    %c0_4 = arith.constant 0 : index
    %4 = vector.load %arg3[%c0_3, %c0_4] : memref<1x128xf32, #tpu.memory_space<vmem>>, vector<1x128xf32>
    %5 = vector.broadcast %4 : vector<1x128xf32> to vector<256x128xf32>
    %6 = arith.addf %3, %5 : vector<256x128xf32>
    %cst_5 = arith.constant 0.000000e+00 : f32
    %7 = vector.broadcast %cst_5 : f32 to vector<256x128xf32>
    %8 = arith.subf %7, %6 : vector<256x128xf32>
    %9 = math.exp %8 : vector<256x128xf32>
    %cst_6 = arith.constant 1.000000e+00 : f32
    %10 = vector.broadcast %cst_6 : f32 to vector<256x128xf32>
    %11 = arith.addf %10, %9 : vector<256x128xf32>
    %12 = tpu.reciprocal %11 {approx = true} : vector<256x128xf32> -> vector<256x128xf32>
    %13 = arith.mulf %0, %12 : vector<256x128xf32>
    %14 = arith.addf %13, %0 : vector<256x128xf32>
    %c0_7 = arith.constant 0 : index
    %c0_8 = arith.constant 0 : index
    %15 = vector.load %arg4[%c0_7, %c0_8] : memref<256x128xf32, #tpu.memory_space<vmem>>, vector<256x128xf32>
    tpu.vector_store %arg4[%c0_7, %c0_8], %14 {strides = array<i32>} : memref<256x128xf32, #tpu.memory_space<vmem>>, vector<256x128xf32>,
    return
  }
  func.func @transform_0(%arg0: i32) -> (i32, i32) {
    %c0_i32 = arith.constant 0 : i32
    %c0_i32_0 = arith.constant 0 : i32
    return %arg0, %c0_i32 : i32, i32
  }
  func.func @transform_1(%arg0: i32) -> (i32, i32) {
    %c0_i32 = arith.constant 0 : i32
    %c0_i32_0 = arith.constant 0 : i32
    %c0_i32_1 = arith.constant 0 : i32
    return %c0_i32, %c0_i32_0 : i32, i32
  }
  func.func @transform_2(%arg0: i32) -> (i32, i32) {
    %c0_i32 = arith.constant 0 : i32
    %c0_i32_0 = arith.constant 0 : i32
    %c0_i32_1 = arith.constant 0 : i32
    return %c0_i32, %c0_i32_0 : i32, i32
  }
  func.func @transform_3(%arg0: i32) -> (i32, i32) {
    %c0_i32 = arith.constant 0 : i32
    %c0_i32_0 = arith.constant 0 : i32
    return %arg0, %c0_i32 : i32, i32
  }
}

</mosaic_0001>

<bundles_post_ra>
// kernel: slam_forward.1
= control target key start
LH: loop header
LB: loop body
LE: loop exit
PB: predicated region body
PF: predicated region fallthrough
CT: control target
= control target key end

     0   :  { %8 = vsyncpa [#allocation3], 0  ;;  %s1613_s0 = inlined_call_operand.hbm [shape: f32[512,128], index: 0, kind: input, shape index: {}]   ;;  %s1614_s1 = inlined_call_operand.hbm [shape: bf16[128,128], index: 1, kind: input, shape index: {}]   ;;  %s1615_s2 = inlined_call_operand.vmem [shape: f32[1,128], index: 2, kind: input, shape index: {}]   ;;  %s1616_s3 = inlined_call_operand.hbm [shape: f32[512,128], index: 3, kind: output, shape index: {}]  }
   0x1   :  { %10 = vsyncpa [#allocation3 + $0x1], 0 }
   0x2   :  { %11 = vsyncpa [#allocation6], 0 }
   0x3   :  { %12 = vsyncpa [#allocation4], 0 }
   0x4   :  { %14 = vsyncpa [#allocation4 + $0x1], 0  ;;  %s1203_s12 = smov 0   ;;  %s1205_s13 = smov 0  }
   0x5   :  { %s1207_s14 = smov 0   ;;  %s1209_s15 = smov 0  }
   0x6 LB: > { %s1224_s16 = sadd.s32 4294967295, %s1174_s15   ;;  %s770_s17 = sadd.s32 4294967294, %s1174_s15   ;;  %s1174_s15 = sphi %s1209_s15, %s1626_s15   ;;  %s1170_s14 = sphi %s1207_s14, %s1625_s14   ;;  %s1166_s13 = sphi %s1205_s13, %s1624_s13   ;;  %s1162_s12 = sphi %s1203_s12, %s1623_s12  }
   0x7   : > { %p40_p0 = scmp.ne.s32.totalorder %s1166_s13, %s1162_s12  ;;  %p41_p1 = scmp.eq.s32.totalorder %s1224_s16, 0 }
   0x8   : > { %p106_p2 = scmp.eq.s32.totalorder %s1224_s16, 1  ;;  %p112_p3 = scmp.eq.s32.totalorder %s770_s17, 1 }
   0x9   : > { %p1233_p4 = por %p41_p1, %p40_p0  ;;  %p771_p5 = scmp.ge.s32.totalorder %s1174_s15, 1 }
   0xa   : > { %p1238_p6 = por %p112_p3, %p40_p0  ;;  %p119_p7 = scmp.lt.s32.totalorder %s1174_s15, 3 }
   0xb   : > { %s130_s22 = sshll.u32 %s1614_s1, 4  ;;  %s1176_s24 = smov [#allocation5]   ;;  %s131_s22 = int_to_ptr.hbm [resolvable:$true] %s130_s22 }
   0xc   : > { %p1246_p8 = pnand %p771_p5, %p119_p7  ;;  %s132_s25 = sshll.u32 %s1176_s24, 4  ;;  %s133_s25 = int_to_ptr.vmem [resolvable:$true] %s132_s25 }
   0xd   : > { %s1256_s26 = sadd.s32 1, %s1174_s15   ;;  %s1177_s27 = smov 64  }
   0xe   : > { %p860_p9 = pneg %p1246_p8  ;;  %s1178_s28 = smov 4  }
   0xf   : > { %s24_s29 = ssub.s32 %s1174_s15, %s1256_s26  ;;  %s27_s30 = sadd.s32 1, %s1170_s14 }
  0x10   : > { %p861_p10 = pnand %p860_p9, %p41_p1  ;;  %p25_p12 = scmp.eq.s32.totalorder %s24_s29, 0 }
  0x11   : > { %p34_p13 = scmp.ne.s32.totalorder %s1170_s14, %s1166_s13  ;;  %p35_p0 = scmp.eq.s32.totalorder %s1174_s15, 0 }
  0x12   : > { %863 = dma.hbm_to_vmem [thread:$0]  (!%p861_p10), %s131_s22, 1024, %s133_s25, [#allocation6], %s1177_s27, %s1177_s27, %s1178_s28  }
  0x13   : > { %p873_p3 = scmp.lt.s32.totalorder %s1174_s15, 2  ;;  %p36_p5 = por %p35_p0, %p34_p13 }
  0x14   : > { %s1266_s4 = scalar_select %p25_p12, %s1170_s14, %s27_s30  }
  0x15   : > { %p1270_p7 = por %p106_p2, %p34_p13  ;;  %s149_s6 = sand.u32 1, %s1170_s14  }
  0x16   : > { %s818_s7 = sshll.u32 %s1174_s15, 8  ;;  %s774_s8 = sshll.u32 %s149_s6, 8 }
  0x17   : > { %s158_s11 = scalar_lea.hbm %s1613_s0, %s818_s7  ;;  %s153_s20 = scalar_lea.vmem [#allocation2], %s774_s8 }
  0x18   : > { %s159_s17 = sshll.u32 %s158_s11, 4  ;;  %s161_s21 = sshll.u32 %s153_s20, 4  ;;  %s160_s17 = int_to_ptr.hbm [resolvable:$true] %s159_s17  ;;  %s162_s21 = int_to_ptr.vmem [resolvable:$true] %s161_s21 }
  0x19   : > { %p1281_p9 = pnand %p873_p3, %p36_p5  ;;  %s150_s24 = scalar_lea.sflag [#allocation3], %s149_s6 }
  0x1a   : > { %s1074_s25 = sshra.s32 %s160_s17, 4  ;;  %s1081_s30 = scalar_lea.hbm %s1613_s0, 512  ;;  %s1075_s25 = int_to_ptr.hbm [resolvable:$true] %s1074_s25 }
  0x1b   : > { %s1076_s27 = scalar_lea.hbm %s1075_s25, 256  ;;  %p1078_p10 = pneg %p1281_p9 }
  0x1c   : > { %p1077_p2 = scmp.ne.s32.totalorder %s1075_s25, %s1076_s27  ;;  %p1082_p0 = scmp.lt.s32.totalorder %s1075_s25, %s1613_s0 }
  0x1d   : > { %p1083_p3 = scmp.lt.s32.totalorder %s1081_s30, %s1076_s27 }
  0x1e   : > { %p1079_p12 = pnand %p1078_p10, %p1077_p2 }
  0x1f   : > { %p1084_p5 = por %p1083_p3, %p1082_p0 }
  0x20   : > { %p1080_p13 = pneg %p1079_p12 }
  0x22   : > { %p1085_p11 = pnand %p1084_p5, %p1080_p13 }
  0x24   : > { %1088 = shalt.err (!%p1085_p11)
}
  0x25   : > { %s1179_s6 = smov 128   ;;  %s1180_s9 = smov 8  }
  0x26   : > { %867 = dma.hbm_to_vmem [thread:$0]  (!%p1281_p9), %s160_s17, 4096, %s162_s21, %s150_s24, %s1179_s6, %s1179_s6, %s1180_s9  }
  0x27   : > { %173 = sbr.rel (%p1246_p8) target bundleno = 305 (0x131), region = 32  ;;  %s1298_s10 = sand.u32 (!%p1246_p8), 1, %s1166_s13  }
  0x28   : > { %s778_s11 = sshll.u32 (!%p1246_p8), %s1298_s10, 8  ;;  %s176_s20 = scalar_lea.sflag (!%p1246_p8), [#allocation3], %s1298_s10 }
  0x29   : > { %s1304_s25 = scalar_lea.vmem (!%p1246_p8), [#allocation2], %s778_s11 }
  0x2c   : > { %1149 = dma.done.wait (%p1233_p4), %s176_s20, 4096  }
  0x2d   : > { %1151 = vsyncadd (%p1233_p4), %s176_s20, 4294963200 }
  0x2e   : > { %1153 = dma.done.wait (%p41_p1), [#allocation6], 1024  }
  0x2f   : > { %1155 = vsyncadd (%p41_p1), [#allocation6], 4294966272  ;;  %v826_v0 = vld [vmem:[#allocation5 + $0x38] sm:$0xff]  ;;  %v825_v1 = vld [vmem:[#allocation5 + $0x30] sm:$0xff]  ;;  %s1466_s17 = scalar_lea.vmem [#allocation7], %s778_s11  ;;  %s827_s21 = sshll.u32 %s1224_s16, 8 }
  0x30   : > { %326 = vmatpush.bf16.msra.mxu0 %v826_v0  ;;  %828 = vmatpush.bf16.msra.mxu1 %v826_v0  ;;  %v824_v2 = vld [vmem:[#allocation5 + $0x28] sm:$0xff]  ;;  %v823_v3 = vld [vmem:[#allocation5 + $0x20] sm:$0xff]  ;;  %v822_v4 = vld [vmem:[#allocation5 + $0x18] sm:$0xff]  ;;  %s683_s27 = scalar_lea.hbm %s1616_s3, %s827_s21  ;;  %s684_s28 = sshll.u32 %s1466_s17, 4  ;;  %s685_s28 = int_to_ptr.vmem [resolvable:$true] %s684_s28 }
  0x31   : > { %829 = vmatpush.bf16.msra.mxu2 %v826_v0  ;;  %830 = vmatpush.bf16.msra.mxu3 %v826_v0  ;;  %v821_v5 = vld [vmem:[#allocation5 + $0x10] sm:$0xff]  ;;  %v820_v6 = vld [vmem:[#allocation5 + $0x8] sm:$0xff]  ;;  %v819_v7 = vld [vmem:[#allocation5] sm:$0xff]  ;;  %s686_s16 = sshll.u32 %s683_s27, 4  ;;  %s672_s29 = scalar_lea.sflag [#allocation4], %s1298_s10  ;;  %s687_s16 = int_to_ptr.hbm [resolvable:$true] %s686_s16 }
  0x32   : > { %v1315_v8 = vld [vmem:[%s1304_s25] sm:$0xff]  ;;  %v1318_v9 = vld [vmem:[%s1304_s25 + $0x8] sm:$0xff]  ;;  %v1347_v20 = vld [vmem:[%s1304_s25 + $0x10] sm:$0xff]  ;;  %s1118_s30 = sshra.s32 %s687_s16, 4  ;;  %s1124_s9 = scalar_lea.hbm %s1616_s3, 512  ;;  %s1119_s30 = int_to_ptr.hbm [resolvable:$true] %s1118_s30 }
  0x33   : > { %v1321_v10 = vld [vmem:[%s1304_s25 + $0x40] sm:$0xff]  ;;  %v1324_v11 = vld [vmem:[%s1304_s25 + $0x48] sm:$0xff]  ;;  %v242_v16 = vpack.c.bf16 %v1318_v9, %v1315_v8  ;;  %v1350_v21 = vld [vmem:[%s1304_s25 + $0x18] sm:$0xff]  ;;  %s1120_s7 = scalar_lea.hbm %s1119_s30, 256  ;;  %p1125_p11 = scmp.lt.s32.totalorder %s1119_s30, %s1616_s3 }
  0x34   : > { %327 = vmatpush.bf16.msra.mxu0 %v825_v1  ;;  %831 = vmatpush.bf16.msra.mxu1 %v825_v1  ;;  %v1327_v12 = vld [vmem:[%s1304_s25 + $0x80] sm:$0xff]  ;;  %v1330_v13 = vld [vmem:[%s1304_s25 + $0x88] sm:$0xff]  ;;  %v246_v17 = vpack.c.bf16 %v1324_v11, %v1321_v10  ;;  %v1353_v22 = vld [vmem:[%s1304_s25 + $0x50] sm:$0xff]  ;;  %v243_v28 = vpack.c.bf16 %v1350_v21, %v1347_v20  ;;  %p1121_p1 = scmp.ne.s32.totalorder %s1119_s30, %s1120_s7  ;;  %p1126_p9 = scmp.lt.s32.totalorder %s1124_s9, %s1120_s7 }
  0x35   : > { %832 = vmatpush.bf16.msra.mxu2 %v825_v1  ;;  %833 = vmatpush.bf16.msra.mxu3 %v825_v1  ;;  %v1333_v14 = vld [vmem:[%s1304_s25 + $0xc0] sm:$0xff]  ;;  %v1336_v15 = vld [vmem:[%s1304_s25 + $0xc8] sm:$0xff]  ;;  %v250_v18 = vpack.c.bf16 %v1330_v13, %v1327_v12  ;;  %v1356_v23 = vld [vmem:[%s1304_s25 + $0x58] sm:$0xff] }
  0x36   : > { %v254_v19 = vpack.c.bf16 %v1336_v15, %v1333_v14  ;;  %v1359_v24 = vld [vmem:[%s1304_s25 + $0x90] sm:$0xff]  ;;  %v1362_v25 = vld [vmem:[%s1304_s25 + $0x98] sm:$0xff]  ;;  %v247_v29 = vpack.c.bf16 %v1356_v23, %v1353_v22  ;;  %v1379_v32 = vld [vmem:[%s1304_s25 + $0x20] sm:$0xff]  ;;  %p1122_p4 = pnand %p1121_p1, %p1270_p7  ;;  %p1127_p2 = por %p1126_p9, %p1125_p11 }
  0x37   : > { %v1365_v26 = vld [vmem:[%s1304_s25 + $0xd0] sm:$0xff]  ;;  %v1368_v27 = vld [vmem:[%s1304_s25 + $0xd8] sm:$0xff]  ;;  %v251_v30 = vpack.c.bf16 %v1362_v25, %v1359_v24  ;;  %v1382_v33 = vld [vmem:[%s1304_s25 + $0x28] sm:$0xff] }
  0x38   : > { %328 = vmatpush.bf16.msra.mxu0 %v824_v2  ;;  %834 = vmatpush.bf16.msra.mxu1 %v824_v2  ;;  %v255_v31 = vpack.c.bf16 %v1368_v27, %v1365_v26  ;;  %v1385_v34 = vld [vmem:[%s1304_s25 + $0x60] sm:$0xff]  ;;  %v1388_v35 = vld [vmem:[%s1304_s25 + $0x68] sm:$0xff]  ;;  %v244_v40 = vpack.c.bf16 %v1382_v33, %v1379_v32  ;;  %v1411_v44 = vld [vmem:[%s1304_s25 + $0x30] sm:$0xff]  ;;  %p1123_p8 = pneg %p1122_p4 }
  0x39   : > { %835 = vmatpush.bf16.msra.mxu2 %v824_v2  ;;  %836 = vmatpush.bf16.msra.mxu3 %v824_v2  ;;  %v1391_v36 = vld [vmem:[%s1304_s25 + $0xa0] sm:$0xff]  ;;  %v1394_v37 = vld [vmem:[%s1304_s25 + $0xa8] sm:$0xff]  ;;  %v248_v41 = vpack.c.bf16 %v1388_v35, %v1385_v34  ;;  %v1414_v45 = vld [vmem:[%s1304_s25 + $0x38] sm:$0xff] }
  0x3a   : > { %v1397_v38 = vld [vmem:[%s1304_s25 + $0xe0] sm:$0xff]  ;;  %v1400_v39 = vld [vmem:[%s1304_s25 + $0xe8] sm:$0xff]  ;;  %v252_v42 = vpack.c.bf16 %v1394_v37, %v1391_v36  ;;  %v1417_v46 = vld [vmem:[%s1304_s25 + $0x70] sm:$0xff]  ;;  %v245_v52 = vpack.c.bf16 %v1414_v45, %v1411_v44  ;;  %p1128_p10 = pnand %p1127_p2, %p1123_p8 }
  0x3b   : > { %v256_v43 = vpack.c.bf16 %v1400_v39, %v1397_v38  ;;  %v1420_v47 = vld [vmem:[%s1304_s25 + $0x78] sm:$0xff]  ;;  %v1423_v48 = vld [vmem:[%s1304_s25 + $0xb0] sm:$0xff]  ;;  %v1445_v56 = vld [vmem:[%s1615_s2] ss:$0 sm:$0xff] }
  0x3c   : > { %329 = vmatpush.bf16.msra.mxu0 %v823_v3  ;;  %837 = vmatpush.bf16.msra.mxu1 %v823_v3  ;;  %v1426_v49 = vld [vmem:[%s1304_s25 + $0xb8] sm:$0xff]  ;;  %v1429_v50 = vld [vmem:[%s1304_s25 + $0xf0] sm:$0xff]  ;;  %v249_v53 = vpack.c.bf16 %v1420_v47, %v1417_v46 }
  0x3d   : > { %838 = vmatpush.bf16.msra.mxu2 %v823_v3  ;;  %839 = vmatpush.bf16.msra.mxu3 %v823_v3  ;;  %v1432_v51 = vld [vmem:[%s1304_s25 + $0xf8] sm:$0xff]  ;;  %v253_v54 = vpack.c.bf16 %v1426_v49, %v1423_v48 }
  0x3e   : > { %v257_v55 = vpack.c.bf16 %v1432_v51, %v1429_v50 }
  0x40   : > { %330 = vmatpush.bf16.msra.mxu0 %v822_v4  ;;  %840 = vmatpush.bf16.msra.mxu1 %v822_v4 }
  0x41   : > { %841 = vmatpush.bf16.msra.mxu2 %v822_v4  ;;  %842 = vmatpush.bf16.msra.mxu3 %v822_v4 }
  0x44   : > { %331 = vmatpush.bf16.msra.mxu0 %v821_v5  ;;  %843 = vmatpush.bf16.msra.mxu1 %v821_v5 }
  0x45   : > { %844 = vmatpush.bf16.msra.mxu2 %v821_v5  ;;  %845 = vmatpush.bf16.msra.mxu3 %v821_v5 }
  0x48   : > { %332 = vmatpush.bf16.msra.mxu0 %v820_v6  ;;  %846 = vmatpush.bf16.msra.mxu1 %v820_v6 }
  0x49   : > { %847 = vmatpush.bf16.msra.mxu2 %v820_v6  ;;  %848 = vmatpush.bf16.msra.mxu3 %v820_v6 }
  0x4c   : > { %333 = vmatpush.bf16.msra.mxu0 %v819_v7  ;;  %849 = vmatpush.bf16.msra.mxu1 %v819_v7 }
  0x4d   : > { %850 = vmatpush.bf16.msra.mxu2 %v819_v7  ;;  %851 = vmatpush.bf16.msra.mxu3 %v819_v7 }
  0x4f   : > { %334 = vmatmul.bf16.vlgmr.msra.gmra.mxu0 %v242_v16  ;;  %354 = vmatmul.bf16.vlgmr.msra.gmra.mxu1 %v246_v17 }
  0x50   : > { %374 = vmatmul.bf16.vlgmr.msra.gmra.mxu2 %v250_v18  ;;  %394 = vmatmul.bf16.vlgmr.msra.gmra.mxu3 %v254_v19 }
  0x5f   : > { %339 = vmatmul.bf16.gmra.mxu0 %v243_v28  ;;  %359 = vmatmul.bf16.gmra.mxu1 %v247_v29 }
  0x60   : > { %379 = vmatmul.bf16.gmra.mxu2 %v251_v30  ;;  %399 = vmatmul.bf16.gmra.mxu3 %v255_v31 }
  0x6f   : > { %344 = vmatmul.bf16.gmra.mxu0 %v244_v40  ;;  %364 = vmatmul.bf16.gmra.mxu1 %v248_v41 }
  0x70   : > { %384 = vmatmul.bf16.gmra.mxu2 %v252_v42  ;;  %404 = vmatmul.bf16.gmra.mxu3 %v256_v43 }
  0x7f   : > { %349 = vmatmul.bf16.gmra.mxu0 %v245_v52  ;;  %369 = vmatmul.bf16.gmra.mxu1 %v249_v53 }
  0x80   : > { %389 = vmatmul.bf16.gmra.mxu2 %v253_v54  ;;  %409 = vmatmul.bf16.gmra.mxu3 %v257_v55 }
  0xcc   : > { %v335_v57 = vpop.f32.mrf.mxu0  ;;  %v355_v58 = vpop.f32.mrf.mxu1 }
  0xcd   : > { %v336_v59 = vadd.f32 %v1445_v56, %v335_v57  ;;  %v356_v60 = vadd.f32 %v1445_v56, %v355_v58 }
  0xcf   : > { %v415_v61 = vsub.f32 0.0, %v336_v59  ;;  %v423_v62 = vsub.f32 0.0, %v356_v60 }
  0xd1   : > { %v447_v63 = vmul.f32 1.442695, %v415_v61  ;;  %v463_v0 = vmul.f32 1.442695, %v423_v62 }
  0xd3   : > { %916 = vpow2.f32 %v447_v63  ;;  %v375_v1 = vpop.f32.mrf.mxu2  ;;  %v395_v2 = vpop.f32.mrf.mxu3 }
  0xd4   : > { %918 = vpow2.f32 %v463_v0  ;;  %v376_v3 = vadd.f32 %v1445_v56, %v375_v1  ;;  %v396_v4 = vadd.f32 %v1445_v56, %v395_v2  ;;  %v337_v5 = vpop.f32.mrf.mxu0  ;;  %v357_v6 = vpop.f32.mrf.mxu1 }
  0xd5   : > { %v338_v7 = vadd.f32 %v1445_v56, %v337_v5  ;;  %v358_v16 = vadd.f32 %v1445_v56, %v357_v6 }
  0xd6   : > { %v431_v17 = vsub.f32 0.0, %v376_v3  ;;  %v439_v18 = vsub.f32 0.0, %v396_v4 }
  0xd7   : > { %v416_v19 = vsub.f32 0.0, %v338_v7  ;;  %v424_v28 = vsub.f32 0.0, %v358_v16 }
  0xd8   : > { %v479_v29 = vmul.f32 1.442695, %v431_v17  ;;  %v495_v30 = vmul.f32 1.442695, %v439_v18 }
  0xd9   : > { %v917_v31 = vpop.eup %916  ;;  %v449_v42 = vmul.f32 1.442695, %v416_v19  ;;  %v465_v52 = vmul.f32 1.442695, %v424_v28 }
  0xda   : > { %v919_v40 = vpop.eup %918  ;;  %v511_v41 = vadd.f32 1.0, %v917_v31  ;;  %920 = vpow2.f32 %v479_v29 }
  0xdb   : > { %v519_v43 = vadd.f32 1.0, %v919_v40  ;;  %922 = vpow2.f32 %v495_v30  ;;  %v377_v53 = vpop.f32.mrf.mxu2  ;;  %v397_v54 = vpop.f32.mrf.mxu3 }
  0xdc   : > { %924 = vrcp.f32 %v511_v41  ;;  %v378_v55 = vadd.f32 %v1445_v56, %v377_v53  ;;  %v398_v57 = vadd.f32 %v1445_v56, %v397_v54  ;;  %v340_v58 = vpop.f32.mrf.mxu0  ;;  %v360_v59 = vpop.f32.mrf.mxu1 }
  0xdd   : > { %926 = vrcp.f32 %v519_v43  ;;  %v341_v60 = vadd.f32 %v1445_v56, %v340_v58  ;;  %v361_v61 = vadd.f32 %v1445_v56, %v360_v59 }
  0xde   : > { %928 = vpow2.f32 %v449_v42  ;;  %v432_v62 = vsub.f32 0.0, %v378_v55  ;;  %v440_v63 = vsub.f32 0.0, %v398_v57 }
  0xdf   : > { %930 = vpow2.f32 %v465_v52  ;;  %v417_v0 = vsub.f32 0.0, %v341_v60  ;;  %v425_v1 = vsub.f32 0.0, %v361_v61 }
  0xe0   : > { %v921_v2 = vpop.eup %920  ;;  %v481_v3 = vmul.f32 1.442695, %v432_v62  ;;  %v497_v6 = vmul.f32 1.442695, %v440_v63 }
  0xe1   : > { %v923_v4 = vpop.eup %922  ;;  %v527_v5 = vadd.f32 1.0, %v921_v2  ;;  %v451_v17 = vmul.f32 1.442695, %v417_v0  ;;  %v467_v28 = vmul.f32 1.442695, %v425_v1 }
  0xe2   : > { %v925_v7 = vpop.eup %924  ;;  %v535_v16 = vadd.f32 1.0, %v923_v4  ;;  %932 = vpow2.f32 %v481_v3 }
  0xe3   : > { %v927_v18 = vpop.eup %926  ;;  %v575_v19 = vmul.f32 %v925_v7, %v1315_v8  ;;  %934 = vrcp.f32 %v527_v5  ;;  %v380_v29 = vpop.f32.mrf.mxu2 }
  0xe4   : > { %v400_v30 = vpop.f32.mrf.mxu3  ;;  %v929_v31 = vpop.eup %928  ;;  %v583_v40 = vmul.f32 %v927_v18, %v1321_v10  ;;  %936 = vrcp.f32 %v535_v16  ;;  %v381_v41 = vadd.f32 %v1445_v56, %v380_v29 }
  0xe5   : > { %v401_v42 = vadd.f32 %v1445_v56, %v400_v30  ;;  %v342_v43 = vpop.f32.mrf.mxu0  ;;  %v362_v52 = vpop.f32.mrf.mxu1  ;;  %v607_v54 = vadd.f32 %v575_v19, %v1315_v8  ;;  %v512_v55 = vadd.f32 1.0, %v929_v31  ;;  %938 = vpow2.f32 %v497_v6 }
  0xe6   : > { %v931_v53 = vpop.eup %930  ;;  %v343_v57 = vadd.f32 %v1445_v56, %v342_v43  ;;  %v615_v58 = vadd.f32 %v583_v40, %v1321_v10  ;;  %940 = vpow2.f32 %v451_v17  ;;  %v433_v60 = vsub.f32 0.0, %v381_v41 }
  0xe7   : > { %v520_v59 = vadd.f32 1.0, %v931_v53  ;;  %639 = vst [vmem:[%s1466_s17] sm:$0xff] %v607_v54  ;;  %942 = vrcp.f32 %v512_v55  ;;  %v441_v61 = vsub.f32 0.0, %v401_v42  ;;  %v363_v8 = vadd.f32 %v1445_v56, %v362_v52 }
  0xe8   : > { %v418_v62 = vsub.f32 0.0, %v343_v57  ;;  %v933_v63 = vpop.eup %932  ;;  %647 = vst [vmem:[%s1466_s17 + $0x40] sm:$0xff] %v615_v58  ;;  %v483_v0 = vmul.f32 1.442695, %v433_v60 }
  0xe9   : > { %944 = vrcp.f32 %v520_v59  ;;  %v935_v1 = vpop.eup %934  ;;  %v528_v10 = vadd.f32 1.0, %v933_v63  ;;  %v499_v2 = vmul.f32 1.442695, %v441_v61  ;;  %v426_v6 = vsub.f32 0.0, %v363_v8 }
  0xea   : > { %946 = vpow2.f32 %v467_v28  ;;  %v453_v3 = vmul.f32 1.442695, %v418_v62  ;;  %v937_v4 = vpop.eup %936  ;;  %v591_v5 = vmul.f32 %v935_v1, %v1327_v12 }
  0xeb   : > { %948 = vpow2.f32 %v483_v0  ;;  %v939_v7 = vpop.eup %938  ;;  %v599_v16 = vmul.f32 %v937_v4, %v1333_v14  ;;  %v382_v17 = vpop.f32.mrf.mxu2  ;;  %v469_v28 = vmul.f32 1.442695, %v426_v6 }
  0xec   : > { %950 = vrcp.f32 %v528_v10  ;;  %v402_v18 = vpop.f32.mrf.mxu3  ;;  %v941_v19 = vpop.eup %940  ;;  %v623_v29 = vadd.f32 %v591_v5, %v1327_v12  ;;  %v536_v30 = vadd.f32 1.0, %v939_v7  ;;  %v383_v52 = vadd.f32 %v1445_v56, %v382_v17 }
  0xed   : > { %952 = vpow2.f32 %v499_v2  ;;  %v345_v31 = vpop.f32.mrf.mxu0  ;;  %v365_v40 = vpop.f32.mrf.mxu1  ;;  %v631_v42 = vadd.f32 %v599_v16, %v1333_v14  ;;  %v513_v43 = vadd.f32 1.0, %v941_v19  ;;  %v403_v12 = vadd.f32 %v1445_v56, %v402_v18 }
  0xee   : > { %v943_v41 = vpop.eup %942  ;;  %954 = vpow2.f32 %v453_v3  ;;  %655 = vst [vmem:[%s1466_s17 + $0x80] sm:$0xff] %v623_v29  ;;  %v346_v55 = vadd.f32 %v1445_v56, %v345_v31  ;;  %v434_v14 = vsub.f32 0.0, %v383_v52  ;;  %v366_v59 = vadd.f32 %v1445_v56, %v365_v40 }
  0xef   : > { %v945_v53 = vpop.eup %944  ;;  %v576_v54 = vmul.f32 %v943_v41, %v1318_v9  ;;  %956 = vrcp.f32 %v536_v30  ;;  %663 = vst [vmem:[%s1466_s17 + $0xc0] sm:$0xff] %v631_v42  ;;  %v442_v8 = vsub.f32 0.0, %v403_v12 }
  0xf0   : > { %v947_v57 = vpop.eup %946  ;;  %v584_v58 = vmul.f32 %v945_v53, %v1324_v11  ;;  %958 = vrcp.f32 %v513_v43  ;;  %v485_v10 = vmul.f32 1.442695, %v434_v14  ;;  %v419_v2 = vsub.f32 0.0, %v346_v55 }
  0xf1   : > { %v949_v60 = vpop.eup %948  ;;  %v608_v61 = vadd.f32 %v576_v54, %v1318_v9  ;;  %v521_v62 = vadd.f32 1.0, %v947_v57  ;;  %960 = vpow2.f32 %v469_v28  ;;  %v427_v5 = vsub.f32 0.0, %v366_v59 }
  0xf2   : > { %v951_v63 = vpop.eup %950  ;;  %v616_v0 = vadd.f32 %v584_v58, %v1324_v11  ;;  %v529_v1 = vadd.f32 1.0, %v949_v60  ;;  %v501_v9 = vmul.f32 1.442695, %v442_v8  ;;  %v455_v16 = vmul.f32 1.442695, %v419_v2 }
  0xf3   : > { %v953_v3 = vpop.eup %952  ;;  %640 = vst [vmem:[%s1466_s17 + $0x8] sm:$0xff] %v608_v61  ;;  %v592_v4 = vmul.f32 %v951_v63, %v1330_v13  ;;  %962 = vrcp.f32 %v521_v62  ;;  %v385_v17 = vpop.f32.mrf.mxu2  ;;  %v471_v30 = vmul.f32 1.442695, %v427_v5 }
  0xf4   : > { %v955_v6 = vpop.eup %954  ;;  %648 = vst [vmem:[%s1466_s17 + $0x48] sm:$0xff] %v616_v0  ;;  %964 = vrcp.f32 %v529_v1  ;;  %v537_v7 = vadd.f32 1.0, %v953_v3  ;;  %v405_v18 = vpop.f32.mrf.mxu3  ;;  %v386_v42 = vadd.f32 %v1445_v56, %v385_v17 }
  0xf5   : > { %v957_v19 = vpop.eup %956  ;;  %v624_v11 = vadd.f32 %v592_v4, %v1330_v13  ;;  %v514_v29 = vadd.f32 1.0, %v955_v6  ;;  %966 = vpow2.f32 %v485_v10  ;;  %v347_v28 = vpop.f32.mrf.mxu0  ;;  %v406_v43 = vadd.f32 %v1445_v56, %v405_v18 }
  0xf6   : > { %v367_v31 = vpop.f32.mrf.mxu1  ;;  %v959_v40 = vpop.eup %958  ;;  %v600_v41 = vmul.f32 %v957_v19, %v1336_v15  ;;  %968 = vrcp.f32 %v537_v7  ;;  %v348_v13 = vadd.f32 %v1445_v56, %v347_v28  ;;  %v435_v57 = vsub.f32 0.0, %v386_v42 }
  0xf7   : > { %v961_v52 = vpop.eup %960  ;;  %656 = vst [vmem:[%s1466_s17 + $0x88] sm:$0xff] %v624_v11  ;;  %v577_v53 = vmul.f32 %v959_v40, %v1347_v20  ;;  %970 = vrcp.f32 %v514_v29  ;;  %v368_v54 = vadd.f32 %v1445_v56, %v367_v31  ;;  %v443_v59 = vsub.f32 0.0, %v406_v43 }
  0xf8   : > { %v632_v12 = vadd.f32 %v600_v41, %v1336_v15  ;;  %v522_v55 = vadd.f32 1.0, %v961_v52  ;;  %972 = vpow2.f32 %v501_v9  ;;  %v420_v60 = vsub.f32 0.0, %v348_v13 }
  0xf9   : > { %v963_v58 = vpop.eup %962  ;;  %v609_v14 = vadd.f32 %v577_v53, %v1347_v20  ;;  %974 = vpow2.f32 %v455_v16  ;;  %v487_v8 = vmul.f32 1.442695, %v435_v57  ;;  %v428_v63 = vsub.f32 0.0, %v368_v54 }
  0xfa   : > { %v965_v61 = vpop.eup %964  ;;  %664 = vst [vmem:[%s1466_s17 + $0xc8] sm:$0xff] %v632_v12  ;;  %v585_v62 = vmul.f32 %v963_v58, %v1353_v22  ;;  %976 = vrcp.f32 %v522_v55  ;;  %v503_v1 = vmul.f32 1.442695, %v443_v59  ;;  %v457_v10 = vmul.f32 1.442695, %v420_v60 }
  0xfb   : > { %v967_v0 = vpop.eup %966  ;;  %641 = vst [vmem:[%s1466_s17 + $0x10] sm:$0xff] %v609_v14  ;;  %v593_v15 = vmul.f32 %v965_v61, %v1359_v24  ;;  %978 = vpow2.f32 %v471_v30  ;;  %v473_v4 = vmul.f32 1.442695, %v428_v63  ;;  %v387_v5 = vpop.f32.mrf.mxu2 }
  0xfc   : > { %v969_v2 = vpop.eup %968  ;;  %v617_v20 = vadd.f32 %v585_v62, %v1353_v22  ;;  %v530_v3 = vadd.f32 1.0, %v967_v0  ;;  %980 = vpow2.f32 %v487_v8  ;;  %v407_v6 = vpop.f32.mrf.mxu3  ;;  %v388_v17 = vadd.f32 %v1445_v56, %v387_v5 }
  0xfd   : > { %v971_v7 = vpop.eup %970  ;;  %v625_v9 = vadd.f32 %v593_v15, %v1359_v24  ;;  %v601_v16 = vmul.f32 %v969_v2, %v1365_v26  ;;  %982 = vpow2.f32 %v503_v1  ;;  %v350_v18 = vpop.f32.mrf.mxu0  ;;  %v408_v29 = vadd.f32 %v1445_v56, %v407_v6 }
  0xfe   : > { %v370_v19 = vpop.f32.mrf.mxu1  ;;  %v973_v11 = vpop.eup %972  ;;  %649 = vst [vmem:[%s1466_s17 + $0x50] sm:$0xff] %v617_v20  ;;  %v578_v22 = vmul.f32 %v971_v7, %v1350_v21  ;;  %984 = vrcp.f32 %v530_v3  ;;  %v351_v30 = vadd.f32 %v1445_v56, %v350_v18  ;;  %v436_v40 = vsub.f32 0.0, %v388_v17 }
  0xff   : > { %v975_v28 = vpop.eup %974  ;;  %657 = vst [vmem:[%s1466_s17 + $0x90] sm:$0xff] %v625_v9  ;;  %v633_v24 = vadd.f32 %v601_v16, %v1365_v26  ;;  %v538_v31 = vadd.f32 1.0, %v973_v11  ;;  %986 = vpow2.f32 %v457_v10  ;;  %v444_v52 = vsub.f32 0.0, %v408_v29 }
 0x100   : > { %v977_v41 = vpop.eup %976  ;;  %v610_v42 = vadd.f32 %v578_v22, %v1350_v21  ;;  %v515_v43 = vadd.f32 1.0, %v975_v28  ;;  %988 = vpow2.f32 %v473_v4  ;;  %v489_v54 = vmul.f32 1.442695, %v436_v40 }
 0x101   : > { %v979_v53 = vpop.eup %978  ;;  %665 = vst [vmem:[%s1466_s17 + $0xd0] sm:$0xff] %v633_v24  ;;  %v586_v13 = vmul.f32 %v977_v41, %v1356_v23  ;;  %990 = vrcp.f32 %v538_v31  ;;  %v421_v12 = vsub.f32 0.0, %v351_v30  ;;  %v371_v57 = vadd.f32 %v1445_v56, %v370_v19 }
 0x102   : > { %v981_v55 = vpop.eup %980  ;;  %642 = vst [vmem:[%s1466_s17 + $0x18] sm:$0xff] %v610_v42  ;;  %992 = vrcp.f32 %v515_v43  ;;  %v523_v26 = vadd.f32 1.0, %v979_v53  ;;  %v505_v59 = vmul.f32 1.442695, %v444_v52 }
 0x103   : > { %v983_v58 = vpop.eup %982  ;;  %v618_v21 = vadd.f32 %v586_v13, %v1356_v23  ;;  %v531_v14 = vadd.f32 1.0, %v981_v55  ;;  %994 = vpow2.f32 %v489_v54  ;;  %v459_v62 = vmul.f32 1.442695, %v421_v12  ;;  %v390_v63 = vpop.f32.mrf.mxu2 }
 0x104   : > { %v985_v60 = vpop.eup %984  ;;  %996 = vrcp.f32 %v523_v26  ;;  %v539_v61 = vadd.f32 1.0, %v983_v58  ;;  %v429_v8 = vsub.f32 0.0, %v371_v57  ;;  %v410_v0 = vpop.f32.mrf.mxu3  ;;  %v391_v10 = vadd.f32 %v1445_v56, %v390_v63 }
 0x105   : > { %v987_v15 = vpop.eup %986  ;;  %650 = vst [vmem:[%s1466_s17 + $0x58] sm:$0xff] %v618_v21  ;;  %v594_v1 = vmul.f32 %v985_v60, %v1362_v25  ;;  %998 = vrcp.f32 %v531_v14  ;;  %v411_v2 = vadd.f32 %v1445_v56, %v410_v0  ;;  %v352_v23 = vpop.f32.mrf.mxu0 }
 0x106   : > { %v989_v20 = vpop.eup %988  ;;  %1000 = vrcp.f32 %v539_v61  ;;  %v516_v3 = vadd.f32 1.0, %v987_v15  ;;  %v475_v4 = vmul.f32 1.442695, %v429_v8  ;;  %v353_v5 = vadd.f32 %v1445_v56, %v352_v23  ;;  %v372_v6 = vpop.f32.mrf.mxu1 }
 0x107   : > { %v991_v7 = vpop.eup %990  ;;  %v626_v9 = vadd.f32 %v594_v1, %v1362_v25  ;;  %v524_v16 = vadd.f32 1.0, %v989_v20  ;;  %1002 = vpow2.f32 %v505_v59  ;;  %v437_v17 = vsub.f32 0.0, %v391_v10 }
 0x108   : > { %v993_v18 = vpop.eup %992  ;;  %v602_v19 = vmul.f32 %v991_v7, %v1368_v27  ;;  %1004 = vrcp.f32 %v516_v3  ;;  %v445_v11 = vsub.f32 0.0, %v411_v2  ;;  %v422_v22 = vsub.f32 0.0, %v353_v5 }
 0x109   : > { %v995_v29 = vpop.eup %994  ;;  %658 = vst [vmem:[%s1466_s17 + $0x98] sm:$0xff] %v626_v9  ;;  %v579_v30 = vmul.f32 %v993_v18, %v1379_v32  ;;  %1006 = vrcp.f32 %v524_v16  ;;  %v491_v28 = vmul.f32 1.442695, %v437_v17  ;;  %v373_v24 = vadd.f32 %v1445_v56, %v372_v6 }
 0x10a   : > { %v997_v31 = vpop.eup %996  ;;  %v634_v25 = vadd.f32 %v602_v19, %v1368_v27  ;;  %v532_v40 = vadd.f32 1.0, %v995_v29  ;;  %1008 = vpow2.f32 %v459_v62  ;;  %v507_v41 = vmul.f32 1.442695, %v445_v11 }
 0x10b   : > { %v999_v42 = vpop.eup %998  ;;  %v611_v43 = vadd.f32 %v579_v30, %v1379_v32  ;;  %v587_v52 = vmul.f32 %v997_v31, %v1385_v34  ;;  %1010 = vpow2.f32 %v475_v4  ;;  %v461_v53 = vmul.f32 1.442695, %v422_v22  ;;  %v392_v55 = vpop.f32.mrf.mxu2 }
 0x10c   : > { %v1001_v13 = vpop.eup %1000  ;;  %666 = vst [vmem:[%s1466_s17 + $0xd8] sm:$0xff] %v634_v25  ;;  %v595_v54 = vmul.f32 %v999_v42, %v1391_v36  ;;  %1012 = vrcp.f32 %v532_v40  ;;  %v430_v12 = vsub.f32 0.0, %v373_v24  ;;  %v393_v32 = vadd.f32 %v1445_v56, %v392_v55  ;;  %v412_v58 = vpop.f32.mrf.mxu3 }
 0x10d   : > { %v1003_v27 = vpop.eup %1002  ;;  %643 = vst [vmem:[%s1466_s17 + $0x20] sm:$0xff] %v611_v43  ;;  %v619_v26 = vadd.f32 %v587_v52, %v1385_v34  ;;  %v603_v57 = vmul.f32 %v1001_v13, %v1397_v38  ;;  %1014 = vpow2.f32 %v491_v28 }
 0x10e   : > { %v1005_v21 = vpop.eup %1004  ;;  %v627_v14 = vadd.f32 %v595_v54, %v1391_v36  ;;  %v540_v59 = vadd.f32 1.0, %v1003_v27  ;;  %1016 = vpow2.f32 %v507_v41  ;;  %v477_v60 = vmul.f32 1.442695, %v430_v12 }
 0x10f   : > { %v1007_v61 = vpop.eup %1006  ;;  %651 = vst [vmem:[%s1466_s17 + $0x60] sm:$0xff] %v619_v26  ;;  %v635_v62 = vadd.f32 %v603_v57, %v1397_v38  ;;  %v580_v34 = vmul.f32 %v1005_v21, %v1382_v33  ;;  %1018 = vpow2.f32 %v461_v53  ;;  %v438_v8 = vsub.f32 0.0, %v393_v32 }
 0x110   : > { %v1009_v63 = vpop.eup %1008  ;;  %659 = vst [vmem:[%s1466_s17 + $0xa0] sm:$0xff] %v627_v14  ;;  %v588_v0 = vmul.f32 %v1007_v61, %v1388_v35  ;;  %1020 = vrcp.f32 %v540_v59  ;;  %v413_v36 = vadd.f32 %v1445_v56, %v412_v58 }
 0x111   : > { %v1011_v15 = vpop.eup %1010  ;;  %667 = vst [vmem:[%s1466_s17 + $0xe0] sm:$0xff] %v635_v62  ;;  %v612_v1 = vadd.f32 %v580_v34, %v1382_v33  ;;  %v517_v10 = vadd.f32 1.0, %v1009_v63  ;;  %1022 = vpow2.f32 %v477_v60  ;;  %v493_v38 = vmul.f32 1.442695, %v438_v8 }
 0x112   : > { %v1013_v2 = vpop.eup %1012  ;;  %v620_v23 = vadd.f32 %v588_v0, %v1388_v35  ;;  %v525_v20 = vadd.f32 1.0, %v1011_v15  ;;  %v446_v3 = vsub.f32 0.0, %v413_v36 }
 0x113   : > { %v1015_v4 = vpop.eup %1014  ;;  %644 = vst [vmem:[%s1466_s17 + $0x28] sm:$0xff] %v612_v1  ;;  %v596_v5 = vmul.f32 %v1013_v2, %v1394_v37  ;;  %1024 = vrcp.f32 %v517_v10 }
 0x114   : > { %v1017_v56 = vpop.eup %1016  ;;  %652 = vst [vmem:[%s1466_s17 + $0x68] sm:$0xff] %v620_v23  ;;  %1026 = vrcp.f32 %v525_v20  ;;  %v533_v6 = vadd.f32 1.0, %v1015_v4  ;;  %v509_v16 = vmul.f32 1.442695, %v446_v3 }
 0x115   : > { %v1019_v7 = vpop.eup %1018  ;;  %v628_v33 = vadd.f32 %v596_v5, %v1394_v37  ;;  %v541_v9 = vadd.f32 1.0, %v1017_v56  ;;  %1028 = vpow2.f32 %v493_v38 }
 0x116   : > { %v1021_v17 = vpop.eup %1020  ;;  %1030 = vrcp.f32 %v533_v6  ;;  %v518_v35 = vadd.f32 1.0, %v1019_v7 }
 0x117   : > { %v1023_v18 = vpop.eup %1022  ;;  %660 = vst [vmem:[%s1466_s17 + $0xa8] sm:$0xff] %v628_v33  ;;  %v604_v19 = vmul.f32 %v1021_v17, %v1400_v39  ;;  %1032 = vrcp.f32 %v541_v9 }
 0x118   : > { %1034 = vrcp.f32 %v518_v35  ;;  %v526_v11 = vadd.f32 1.0, %v1023_v18 }
 0x119   : > { %v1025_v22 = vpop.eup %1024  ;;  %v636_v29 = vadd.f32 %v604_v19, %v1400_v39  ;;  %1036 = vpow2.f32 %v509_v16 }
 0x11a   : > { %v1027_v37 = vpop.eup %1026  ;;  %v581_v30 = vmul.f32 %v1025_v22, %v1411_v44  ;;  %1038 = vrcp.f32 %v526_v11 }
 0x11b   : > { %v1029_v28 = vpop.eup %1028  ;;  %668 = vst [vmem:[%s1466_s17 + $0xe8] sm:$0xff] %v636_v29  ;;  %v589_v24 = vmul.f32 %v1027_v37, %v1417_v46 }
 0x11c   : > { %v1031_v31 = vpop.eup %1030  ;;  %v613_v25 = vadd.f32 %v581_v30, %v1411_v44  ;;  %v534_v40 = vadd.f32 1.0, %v1029_v28 }
 0x11d   : > { %v1033_v41 = vpop.eup %1032  ;;  %v621_v42 = vadd.f32 %v589_v24, %v1417_v46  ;;  %v597_v39 = vmul.f32 %v1031_v31, %v1423_v48 }
 0x11e   : > { %v1035_v43 = vpop.eup %1034  ;;  %645 = vst [vmem:[%s1466_s17 + $0x30] sm:$0xff] %v613_v25  ;;  %v605_v52 = vmul.f32 %v1033_v41, %v1429_v50  ;;  %1040 = vrcp.f32 %v534_v40 }
 0x11f   : > { %v1037_v53 = vpop.eup %1036  ;;  %653 = vst [vmem:[%s1466_s17 + $0x70] sm:$0xff] %v621_v42  ;;  %v629_v44 = vadd.f32 %v597_v39, %v1423_v48  ;;  %v582_v13 = vmul.f32 %v1035_v43, %v1414_v45 }
 0x120   : > { %v1039_v54 = vpop.eup %1038  ;;  %v637_v46 = vadd.f32 %v605_v52, %v1429_v50  ;;  %v542_v12 = vadd.f32 1.0, %v1037_v53 }
 0x121   : > { %661 = vst [vmem:[%s1466_s17 + $0xb0] sm:$0xff] %v629_v44  ;;  %v614_v55 = vadd.f32 %v582_v13, %v1414_v45  ;;  %v590_v27 = vmul.f32 %v1039_v54, %v1420_v47 }
 0x122   : > { %669 = vst [vmem:[%s1466_s17 + $0xf0] sm:$0xff] %v637_v46  ;;  %1042 = vrcp.f32 %v542_v12 }
 0x123   : > { %646 = vst [vmem:[%s1466_s17 + $0x38] sm:$0xff] %v614_v55  ;;  %v622_v48 = vadd.f32 %v590_v27, %v1420_v47 }
 0x124   : > { %v1041_v26 = vpop.eup %1040 }
 0x125   : > { %654 = vst [vmem:[%s1466_s17 + $0x78] sm:$0xff] %v622_v48  ;;  %v598_v50 = vmul.f32 %v1041_v26, %v1426_v49 }
 0x127   : > { %v630_v45 = vadd.f32 %v598_v50, %v1426_v49 }
 0x128   : > { %v1043_v57 = vpop.eup %1042 }
 0x129   : > { %662 = vst [vmem:[%s1466_s17 + $0xb8] sm:$0xff] %v630_v45  ;;  %v606_v32 = vmul.f32 %v1043_v57, %v1432_v51 }
 0x12b   : > { %v638_v47 = vadd.f32 %v606_v32, %v1432_v51 }
 0x12d   : > { %670 = vst [vmem:[%s1466_s17 + $0xf8] sm:$0xff] %v638_v47 }
 0x12e   : > { %1131 = shalt.err (!%p1128_p10)
}
 0x12f   : > { %s1181_s10 = smov 128   ;;  %s1182_s25 = smov 8  }
 0x130   : > { %858 = dma.vmem_to_hbm [thread:$0]  (%p1270_p7), %s685_s28, 4096, %s687_s16, %s672_s29, %s1181_s10, %s1181_s10, %s1182_s25  }
 0x131 PF: > { %s701_s18 = sand.u32 1, %s1162_s12   ;;  %p1622_p12 = scmp.ge.s32.totalorder %s1174_s15, 2 }
 0x132   : > { %s702_s23 = scalar_lea.sflag [#allocation4], %s701_s18 }
 0x133   : > { %p869_p13 = pnand %p1622_p12, %p1238_p6 }
 0x135   : > { %p870_p0 = pneg %p869_p13 }
 0x137   : > { %1157 = dma.done.wait (%p870_p0), %s702_s23, 4096  }
 0x138   : > { %1159 = vsyncadd (%p870_p0), %s702_s23, 4294963200  ;;  %p17_p3 = scmp.ge.s32.totalorder %s1256_s26, 4   ;;  %s1623_s12 = smov %s1166_s13 }
 0x139   : > { %s1624_s13 = smov %s1170_s14  ;;  %s1625_s14 = smov %s1266_s4 }
 0x13a   : > { %s1626_s15 = smov %s1256_s26  ;;  %19 = sbr.rel (!%p17_p3) target bundleno = 6 (0x6), region = 81 }
 0x13f   :  { %708 = vsyncpa [#allocation3], 1 }
 0x140   :  { %710 = vsyncpa [#allocation3 + $0x1], 1 }
 0x141   :  { %711 = vsyncpa [#allocation6], 1 }
 0x142   :  { %712 = vsyncpa [#allocation4], 1 }
 0x143   :  { %714 = vsyncpa [#allocation4 + $0x1], 1 }

</bundles_post_ra>
